<compile_context>
chip_gen: v6e
topology: v6e:2x2x1
jax: 0.10.0
libtpu: 0.0.40
codegen_flags: <defaults>
</compile_context>

<pallas_src>
import jax
import jax.numpy as jnp
from jax.experimental import pallas as pl
from jax.experimental.pallas import tpu as pltpu


def _device_kind() -> str:
    try:
        return jax.devices()[0].device_kind.lower()
    except Exception:
        return ""


def _default_tile_n() -> int:
    kind = _device_kind()
    if "v7" in kind:
        return 131072   # 3.2 TB/s HBM: need the largest tiles to amortize ~0.35 us/step
    if "v5" in kind:
        return 32768    # 0.82 TB/s
    return 65536        # v6e (1.3 TB/s) and fallback


def _default_num_slices() -> int:
    # 2-way "parallel" split only pays off on parts with 2 TensorCores per chip (v7x);
    # v5e/v6e are single-TC where parallel-vs-arbitrary is a measured no-op.
    return 2 if "v7" in _device_kind() else 1


class SoftmaxFocalClassificationLossPallas:
    """Pallas TPU implementation of SoftmaxFocalClassificationLoss.forward."""

    def __init__(self, gamma: float = 2.0, alpha: float = 0.25):
        # Stored for parity with the reference __init__; unused in forward (dead code there).
        self.gamma = gamma
        self.alpha = alpha

    def __call__(self, logits, target, weights, *, tile_n=None, num_slices=None,
                 class_major: bool = False):
        if class_major:
            # logits already provided class-major (C, N): zero wrapper-side HBM passes.
            c, n = logits.shape
            logits_cn = logits
        else:
            n, c = logits.shape
            # TODO(synk): ideally the producing head emits logits class-major (C, N)
            # (its final matmul can do so for free) -- pass class_major=True then and this
            # one extra HBM read+write pass disappears.
            logits_cn = logits.T
        assert target.shape == (n,) and weights.shape == (n,)

        # Lane-dense tiling: anchors on the 128-lane axis, classes on sublanes.
        if tile_n is None:
            tile_n = _default_tile_n()
        tile_n = max(128, (int(tile_n) // 128) * 128)        # enforce multiple of 128
        tile_n = min(tile_n, pl.cdiv(n, 128) * 128)

        n_blocks = pl.cdiv(n, tile_n)
        if num_slices is None:
            num_slices = _default_num_slices()
        if n_blocks < 2 * num_slices:                        # each core must amortize warm-up
            num_slices = 1
        tiles_per_slice = pl.cdiv(n_blocks, num_slices)
        last_block = n_blocks - 1

        # Pack target (exact int32 bits) + weights into one (2, N) f32 carrier:
        # 2 input DMAs per grid step instead of 3.
        target_bits = jax.lax.bitcast_convert_type(target.astype(jnp.int32), jnp.float32)
        aux = jnp.stack([target_bits, weights.astype(jnp.float32)], axis=0)   # (2, N)

        def data_map(s, j):
            # Clamp so the duplicated trailing block of an uneven slice split stays
            # in-bounds; its contribution is zeroed by the in-kernel lane mask.
            return (0, jnp.minimum(s * tiles_per_slice + j, last_block))

        def kernel(logits_ref, aux_ref, out_ref):
            # logits_ref: (C, TN)  classes on sublanes, anchors on lanes
            # aux_ref   : (2, TN)  row 0 = target bits (int32), row 1 = weights (f32)
            # out_ref   : (1, TN)  per-lane partial sums, resident across the inner grid axis
            s = pl.program_id(0)
            j = pl.program_id(1)

            @pl.when(j == 0)
            def _():
                out_ref[...] = jnp.zeros_like(out_ref)

            x = logits_ref[...].astype(jnp.float32)       # cast after DMA; HBM stays narrow
            aux_blk = aux_ref[...]                        # (2, TN) f32 carrier
            t = pltpu.bitcast(aux_blk[0:1, :], jnp.int32)  # (1, TN) int32 class ids
            w = aux_blk[1:2, :]                            # (1, TN) f32 weights

            # numerically-stable log-softmax over the class (sublane) axis;
            # xm reused for both exp() and the target gather (lower vreg pressure).
            m = jnp.max(x, axis=0, keepdims=True)                               # (1, TN)
            xm = x - m                                                          # (C, TN)
            lse_m = jnp.log(jnp.sum(jnp.exp(xm), axis=0, keepdims=True))        # lse - m
            cls_ids = jax.lax.broadcasted_iota(jnp.int32, xm.shape, 0)          # (C, TN)
            xt_m = jnp.sum(jnp.where(cls_ids == t, xm, 0.0), axis=0,
                           keepdims=True)                                       # x_t - m
            ce = lse_m - xt_m                                                   # (1, TN)
            # TODO(synk): reference computes pt = exp(-ce) but never applies the focal term;
            #             reproduced faithfully (weighted CE mean only).

            # Ragged-tail / duplicate-block mask: a SELECT (not weight*0), so garbage or
            # undefined out-of-bounds logits can never inject NaN into the partial sums.
            lane = jax.lax.broadcasted_iota(jnp.int32, (1, tile_n), 1)
            base = (s * tiles_per_slice + j) * tile_n
            valid = (base + lane) < n
            out_ref[...] += jnp.where(valid, ce * w, jnp.float32(0.0))

        comp_kwargs = dict(dimension_semantics=("parallel", "arbitrary"))
        # Double-buffered working set: logits + aux + resident output.
        vmem_need = (2 * c * tile_n * logits_cn.dtype.itemsize
                     + 2 * 2 * tile_n * 4 + 2 * tile_n * 4)
        if vmem_need > 12 * 1024 * 1024:
            # Raise the scoped limit instead of shrinking the tile (VMEM is not the
            # constraint even on v7x's 64 MiB).
            comp_kwargs["vmem_limit_bytes"] = int(min(vmem_need + 4 * 1024 * 1024,
                                                      60 * 1024 * 1024))

        partials = pl.pallas_call(
            kernel,
            out_shape=jax.ShapeDtypeStruct((num_slices, tile_n), jnp.float32),
            grid_spec=pltpu.PrefetchScalarGridSpec(
                num_scalar_prefetch=0,
                grid=(num_slices, tiles_per_slice),
                in_specs=[
                    pl.BlockSpec((c, tile_n), data_map),
                    pl.BlockSpec((2, tile_n), data_map),
                ],
                out_specs=pl.BlockSpec((1, tile_n), lambda s, j: (s, 0)),
            ),
            compiler_params=pltpu.CompilerParams(**comp_kwargs),
        )(logits_cn, aux)

        # Single cross-lane reduce + mean over the TRUE anchor count, done once in XLA.
        return jnp.sum(partials) / jnp.float32(n)


def _reference_jax(logits, target, weights):
    logp = jax.nn.log_softmax(logits.astype(jnp.float32), axis=-1)
    ce = -jnp.take_along_axis(logp, target.astype(jnp.int32)[:, None], axis=-1)[:, 0]
    return jnp.mean(ce * weights.astype(jnp.float32))


def _make_case(key, n, c, dtype=jnp.float32):
    k1, k2, k3 = jax.random.split(key, 3)
    logits = jax.random.normal(k1, (n, c), dtype=jnp.float32).astype(dtype)
    target = jax.random.randint(k2, (n,), 0, c, dtype=jnp.int32)
    weights = jax.random.uniform(k3, (n,), dtype=jnp.float32)
    return logits, target, weights


if __name__ == "__main__":
    loss_fn = SoftmaxFocalClassificationLossPallas(gamma=2.0, alpha=0.25)
    key = jax.random.PRNGKey(0)
    keys = jax.random.split(key, 6)

    cases = [
        # (key, N, C, kwargs, logits dtype)
        (keys[0], 256, 8, {}, jnp.float32),                 # single tile, auto defaults
        (keys[1], 300, 8, {}, jnp.float32),                 # ragged tail (N % 128 != 0), in-kernel mask
        (keys[2], 300, 3, {}, jnp.float32),                 # small class count (full-dim sublane block)
        (keys[3], 5000, 8, {"tile_n": 512, "num_slices": 2}, jnp.float32),  # multi-tile + 2-slice split
        (keys[4], 4500, 8, {"tile_n": 512, "num_slices": 2}, jnp.float32),  # odd block count -> clamped dup block
        (keys[5], 1024, 8, {"tile_n": 256}, jnp.bfloat16),  # narrow HBM dtype, cast after DMA
    ]

    for ck, n, c, kwargs, dtype in cases:
        logits, target, weights = _make_case(ck, n, c, dtype)
        loss = jax.block_until_ready(loss_fn(logits, target, weights, **kwargs))
        ref = _reference_jax(logits, target, weights)
        assert jnp.allclose(loss, ref, rtol=1e-4, atol=1e-5), (n, c, float(loss), float(ref))

    # class-major (C, N) input path: no wrapper transpose pass at all.
    logits, target, weights = _make_case(keys[0], 384, 8, jnp.float32)
    loss = jax.block_until_ready(loss_fn(logits.T, target, weights, class_major=True))
    ref = _reference_jax(logits, target, weights)
    assert jnp.allclose(loss, ref, rtol=1e-4, atol=1e-5), (float(loss), float(ref))

    print("KERNEL_OK")
</pallas_src>

<mosaic_0001>
module attributes {stable_mosaic.version = 11 : i64} {
  func.func @kernel(%arg0: i32, %arg1: i32, %arg2: memref<8x256xf32, #tpu.memory_space<vmem>>, %arg3: memref<2x256xf32, #tpu.memory_space<vmem>>, %arg4: memref<1x256xf32, #tpu.memory_space<vmem>>) attributes {dimension_semantics = [#tpu.dimension_semantics<parallel>, #tpu.dimension_semantics<arbitrary>], iteration_bounds = array<i64: 1, 1>, scalar_prefetch = 0 : i64, scratch_operands = 0 : i64, tpu.core_type = #tpu.core_type<tc>, window_params = [{transform_indices = @transform_0, window_bounds = array<i64: 8, 256>}, {transform_indices = @transform_1, window_bounds = array<i64: 2, 256>}, {transform_indices = @transform_2, window_bounds = array<i64: 1, 256>}]} {
    %c0_i32 = arith.constant 0 : i32
    %0 = arith.cmpi eq, %arg1, %c0_i32 : i32
    %1 = arith.extui %0 : i1 to i32
    %c0_i32_0 = arith.constant 0 : i32
    %2 = arith.cmpi ne, %1, %c0_i32_0 : i32
    scf.if %2 {
      %cst_13 = arith.constant 0.000000e+00 : f32
      %38 = vector.broadcast %cst_13 : f32 to vector<1x256xf32>
      %c0_14 = arith.constant 0 : index
      %c0_15 = arith.constant 0 : index
      %39 = vector.load %arg4[%c0_14, %c0_15] : memref<1x256xf32, #tpu.memory_space<vmem>>, vector<1x256xf32>
      tpu.vector_store %arg4[%c0_14, %c0_15], %38 {strides = array<i32>} : memref<1x256xf32, #tpu.memory_space<vmem>>, vector<1x256xf32>,
    } else {
    }
    %c0 = arith.constant 0 : index
    %c0_1 = arith.constant 0 : index
    %3 = vector.load %arg2[%c0, %c0_1] : memref<8x256xf32, #tpu.memory_space<vmem>>, vector<8x256xf32>
    %c0_2 = arith.constant 0 : index
    %c0_3 = arith.constant 0 : index
    %4 = vector.load %arg3[%c0_2, %c0_3] : memref<2x256xf32, #tpu.memory_space<vmem>>, vector<2x256xf32>
    %5 = vector.extract_strided_slice %4 {offsets = [0, 0], sizes = [1, 256], strides = [1, 1]} : vector<2x256xf32> to vector<1x256xf32>
    %6 = tpu.bitcast %5 : vector<1x256xf32> -> vector<1x256xi32>
    %7 = vector.extract_strided_slice %4 {offsets = [1, 0], sizes = [1, 256], strides = [1, 1]} : vector<2x256xf32> to vector<1x256xf32>
    %cst = arith.constant dense<0xFF800000> : vector<256xf32>
    %8 = vector.multi_reduction <maximumf>, %3, %cst [0] : vector<8x256xf32> to vector<256xf32>
    %9 = vector.shape_cast %8 : vector<256xf32> to vector<1x256xf32>
    %10 = vector.broadcast %9 : vector<1x256xf32> to vector<8x256xf32>
    %11 = arith.subf %3, %10 : vector<8x256xf32>
    %12 = math.exp %11 : vector<8x256xf32>
    %cst_4 = arith.constant dense<0.000000e+00> : vector<256xf32>
    %13 = vector.multi_reduction <add>, %12, %cst_4 [0] : vector<8x256xf32> to vector<256xf32>
    %14 = vector.shape_cast %13 : vector<256xf32> to vector<1x256xf32>
    %15 = math.log %14 : vector<1x256xf32>
    %16 = tpu.iota {dimensions = array<i32: 0>} : vector<8x256xi32>
    %17 = vector.broadcast %6 : vector<1x256xi32> to vector<8x256xi32>
    %18 = arith.cmpi eq, %16, %17 : vector<8x256xi32>
    %cst_5 = arith.constant 0.000000e+00 : f32
    %19 = vector.broadcast %cst_5 : f32 to vector<8x256xf32>
    %20 = arith.select %18, %11, %19 : vector<8x256xi1>, vector<8x256xf32>
    %cst_6 = arith.constant dense<0.000000e+00> : vector<256xf32>
    %21 = vector.multi_reduction <add>, %20, %cst_6 [0] : vector<8x256xf32> to vector<256xf32>
    %22 = vector.shape_cast %21 : vector<256xf32> to vector<1x256xf32>
    %23 = arith.subf %15, %22 : vector<1x256xf32>
    %24 = tpu.iota {dimensions = array<i32: 1>} : vector<1x256xi32>
    %c1_i32 = arith.constant 1 : i32
    %25 = arith.muli %arg0, %c1_i32 : i32
    %26 = arith.addi %25, %arg1 : i32
    %c256_i32 = arith.constant 256 : i32
    %27 = arith.muli %26, %c256_i32 : i32
    %28 = vector.broadcast %27 : i32 to vector<1x256xi32>
    %29 = arith.addi %28, %24 : vector<1x256xi32>
    %c256_i32_7 = arith.constant 256 : i32
    %30 = vector.broadcast %c256_i32_7 : i32 to vector<1x256xi32>
    %31 = arith.cmpi slt, %29, %30 : vector<1x256xi32>
    %c0_8 = arith.constant 0 : index
    %c0_9 = arith.constant 0 : index
    %32 = vector.load %arg4[%c0_8, %c0_9] : memref<1x256xf32, #tpu.memory_space<vmem>>, vector<1x256xf32>
    %33 = arith.mulf %23, %7 : vector<1x256xf32>
    %cst_10 = arith.constant 0.000000e+00 : f32
    %34 = vector.broadcast %cst_10 : f32 to vector<1x256xf32>
    %35 = arith.select %31, %33, %34 : vector<1x256xi1>, vector<1x256xf32>
    %36 = arith.addf %32, %35 : vector<1x256xf32>
    %c0_11 = arith.constant 0 : index
    %c0_12 = arith.constant 0 : index
    %37 = vector.load %arg4[%c0_11, %c0_12] : memref<1x256xf32, #tpu.memory_space<vmem>>, vector<1x256xf32>
    tpu.vector_store %arg4[%c0_11, %c0_12], %36 {strides = array<i32>} : memref<1x256xf32, #tpu.memory_space<vmem>>, vector<1x256xf32>,
    return
  }
  func.func @transform_0(%arg0: i32, %arg1: i32) -> (i32, i32) {
    %c1_i32 = arith.constant 1 : i32
    %0 = arith.muli %arg0, %c1_i32 : i32
    %1 = arith.addi %0, %arg1 : i32
    %c0_i32 = arith.constant 0 : i32
    %2 = arith.minsi %1, %c0_i32 : i32
    %c0_i32_0 = arith.constant 0 : i32
    %c0_i32_1 = arith.constant 0 : i32
    return %c0_i32_0, %2 : i32, i32
  }
  func.func @transform_1(%arg0: i32, %arg1: i32) -> (i32, i32) {
    %c1_i32 = arith.constant 1 : i32
    %0 = arith.muli %arg0, %c1_i32 : i32
    %1 = arith.addi %0, %arg1 : i32
    %c0_i32 = arith.constant 0 : i32
    %2 = arith.minsi %1, %c0_i32 : i32
    %c0_i32_0 = arith.constant 0 : i32
    %c0_i32_1 = arith.constant 0 : i32
    return %c0_i32_0, %2 : i32, i32
  }
  func.func @transform_2(%arg0: i32, %arg1: i32) -> (i32, i32) {
    %c0_i32 = arith.constant 0 : i32
    %c0_i32_0 = arith.constant 0 : i32
    return %arg0, %c0_i32 : i32, i32
  }
}

</mosaic_0001>

<bundles_post_ra>
// kernel: tpu_custom_call.1
= control target key start
LH: loop header
LB: loop body
LE: loop exit
PB: predicated region body
PF: predicated region fallthrough
CT: control target
= control target key end

     0   :  { %7 = vsyncpa [#allocation3], 0  ;;  %s324_s0 = inlined_call_operand.hbm [shape: f32[8,256], index: 0, kind: input, shape index: {}]   ;;  %s325_s1 = inlined_call_operand.hbm [shape: f32[2,256], index: 1, kind: input, shape index: {}]   ;;  %s326_s2 = inlined_call_operand.hbm [shape: f32[1,256], index: 2, kind: output, shape index: {}]  }
   0x1   :  { %8 = vsyncpa [#allocation6], 0 }
   0x2   :  { %9 = vsyncpa [#allocation4], 0  ;;  %s287_s9 = smov [#allocation2]   ;;  %s288_s11 = smov [#allocation5]  }
   0x3   :  { %s22_s10 = sshll.u32 %s287_s9, 4  ;;  %s38_s12 = sshll.u32 %s288_s11, 4  ;;  %s23_s10 = int_to_ptr.vmem [resolvable:$true] %s22_s10  ;;  %s39_s12 = int_to_ptr.vmem [resolvable:$true] %s38_s12 }
   0x4   :  { %s229_s13 = scalar_lea.vmem %s23_s10, 256  ;;  %p234_p1 = scmp.lt.s32.totalorder %s23_s10, %s23_s10 }
   0x5   :  { %p230_p0 = scmp.ne.s32.totalorder %s23_s10, %s229_s13  ;;  %p235_p2 = scmp.lt.s32.totalorder %s229_s13, %s229_s13 }
   0x7   :  { %p236_p3 = por %p235_p2, %p234_p1 }
   0x9   :  { %p237_p4 = pnand %p236_p3, %p230_p0 }
   0xb   :  { %240 = shalt.err (!%p237_p4)
}
   0xc   :  { %25 = dma.hbm_to_vmem [thread:$0]  %s324_s0, 256, %s23_s10, [#allocation3]  }
   0xd   :  { %s249_s16 = scalar_lea.vmem %s39_s12, 64  ;;  %p254_p6 = scmp.lt.s32.totalorder %s39_s12, %s39_s12 }
   0xe   :  { %p250_p5 = scmp.ne.s32.totalorder %s39_s12, %s249_s16  ;;  %p255_p7 = scmp.lt.s32.totalorder %s249_s16, %s249_s16 }
  0x10   :  { %p256_p8 = por %p255_p7, %p254_p6 }
  0x12   :  { %p257_p9 = pnand %p256_p8, %p250_p5 }
  0x14   :  { %260 = shalt.err (!%p257_p9)
}
  0x15   :  { %41 = dma.hbm_to_vmem [thread:$0]  %s325_s1, 64, %s39_s12, [#allocation6]  }
  0x16   :  { %281 = dma.done.wait [#allocation3], 256  }
  0x17   :  { %282 = vsyncadd [#allocation3], 4294967040 }
  0x18   :  { %283 = dma.done.wait [#allocation6], 64  }
  0x19   :  { %284 = vsyncadd [#allocation6], 4294967232  ;;  %v60_v0 = vlaneseq  ;;  %v289_v2 = vmov 0.0   ;;  %v65_v3 = vld [vmem:[#allocation2] sm:$0xff]  ;;  %v66_v4 = vld [vmem:[#allocation2 + $0x8] sm:$0xff]  ;;  %s291_s0 = smov [#allocation7]  }
  0x1a   :  { %v77_v5 = vrot.slane %v65_v3, 4  ;;  %v83_v6 = vrot.slane %v66_v4, 4  ;;  %v67_v23 = vld [vmem:[#allocation5] sm:$0xf]  ;;  %v290_v57 = vmov 1966171168  }
  0x1b   :  { %vm313_vm0 = vcmp.lt.s32.totalorder %v60_v0, 256  ;;  %v70_v17 = vshrl.u32 %v60_v0, 7  ;;  %v168_v58 = vunpack.c.l.s4 %v290_v57  ;;  %s194_s1 = sshll.u32 %s291_s0, 4  ;;  %s195_s1 = int_to_ptr.vmem [resolvable:$true] %s194_s1 }
  0x1c   :  { %64 = vst.msk [vmem:[#allocation7] sm:$0x3] %vm313_vm0, %v289_v2  ;;  %v78_v7 = vmax.f32 %v65_v3, %v77_v5  ;;  %v84_v8 = vmax.f32 %v66_v4, %v83_v6  ;;  %s261_s19 = scalar_lea.vmem %s195_s1, 32  ;;  %p266_p11 = scmp.lt.s32.totalorder %s195_s1, %s195_s1 }
  0x1d   :  { %v71_v22 = vsub.s32 0, %v70_v17  ;;  %v75_v24 = vsub.s32 2, %v70_v17  ;;  %v152_v55 = vsub.s32 1, %v70_v17  ;;  %v156_v56 = vsub.s32 3, %v70_v17  ;;  %p262_p10 = scmp.ne.s32.totalorder %s195_s1, %s261_s19  ;;  %p267_p12 = scmp.lt.s32.totalorder %s261_s19, %s261_s19 }
  0x1e   :  { %v79_v9 = vrot.slane %v78_v7, 2  ;;  %v85_v10 = vrot.slane %v84_v8, 2 }
  0x1f   :  { %v72_v25 = vrot.slane %v67_v23, %v71_v22  ;;  %v76_v26 = vrot.slane %v67_v23, %v75_v24  ;;  %v153_v0 = vrot.slane %v67_v23, %v152_v55  ;;  %p268_p13 = por %p267_p12, %p266_p11 }
  0x20   :  { %v80_v11 = vmax.f32 %v78_v7, %v79_v9  ;;  %v86_v12 = vmax.f32 %v84_v8, %v85_v10 }
  0x21   :  { %v116_v27 = vrot.slane %v72_v25, %v71_v22  ;;  %v120_v28 = vrot.slane %v76_v26, %v71_v22  ;;  %p269_p0 = pnand %p268_p13, %p262_p10 }
  0x22   :  { %v81_v13 = vrot.slane %v80_v11, 1  ;;  %v87_v14 = vrot.slane %v86_v12, 1 }
  0x23   :  { %vm121_vm1 = vcmp.eq.s32.totalorder %v70_v17, %v116_v27  ;;  %vm122_vm2 = vcmp.eq.s32.totalorder %v70_v17, %v120_v28 }
  0x24   :  { %v82_v15 = vmax.f32 %v80_v11, %v81_v13  ;;  %v88_v16 = vmax.f32 %v86_v12, %v87_v14  ;;  %v149_v12 = vld [vmem:[#allocation7] sm:$0x3] }
  0x26   :  { %v89_v18 = vsub.f32 %v65_v3, %v82_v15  ;;  %v90_v19 = vsub.f32 %v66_v4, %v88_v16  ;;  %v157_v3 = vrot.slane %v67_v23, %v156_v56  ;;  %v169_v4 = vunpack.c.0.s8 %v168_v58 }
  0x28   :  { %v91_v20 = vmul.f32 1.442695, %v89_v18  ;;  %v93_v21 = vmul.f32 1.442695, %v90_v19  ;;  %v123_v33 = vsel %vm121_vm1, %v89_v18, 0.0  ;;  %v124_v35 = vsel %vm122_vm2, %v90_v19, 0.0 }
  0x29   :  { %v125_v38 = vrot.slane %v123_v33, 4  ;;  %v131_v40 = vrot.slane %v124_v35, 4  ;;  %v172_v9 = vsub.s32 %v169_v4, %v70_v17 }
  0x2a   :  { %213 = vpow2.f32 %v91_v20 }
  0x2b   :  { %215 = vpow2.f32 %v93_v21  ;;  %v126_v44 = vadd.f32 %v125_v38, %v123_v33  ;;  %v132_v46 = vadd.f32 %v131_v40, %v124_v35 }
  0x2d   :  { %v127_v49 = vrot.slane %v126_v44, 2  ;;  %v133_v50 = vrot.slane %v132_v46, 2 }
  0x2f   :  { %v128_v51 = vadd.f32 %v127_v49, %v126_v44  ;;  %v134_v52 = vadd.f32 %v133_v50, %v132_v46 }
  0x31   :  { %v129_v53 = vrot.slane %v128_v51, 1  ;;  %v135_v54 = vrot.slane %v134_v52, 1 }
  0x33   :  { %v130_v59 = vadd.f32 %v129_v53, %v128_v51  ;;  %v136_v61 = vadd.f32 %v135_v54, %v134_v52 }
  0x37   :  { %v214_v29 = vpop.eup %213 }
  0x38   :  { %v216_v30 = vpop.eup %215  ;;  %v95_v31 = vrot.slane %v214_v29, 4 }
  0x39   :  { %v101_v32 = vrot.slane %v216_v30, 4 }
  0x3a   :  { %v96_v34 = vadd.f32 %v214_v29, %v95_v31 }
  0x3b   :  { %v102_v36 = vadd.f32 %v216_v30, %v101_v32 }
  0x3c   :  { %v97_v37 = vrot.slane %v96_v34, 2 }
  0x3d   :  { %v103_v39 = vrot.slane %v102_v36, 2 }
  0x3e   :  { %v98_v41 = vadd.f32 %v97_v37, %v96_v34 }
  0x3f   :  { %v104_v42 = vadd.f32 %v103_v39, %v102_v36 }
  0x40   :  { %v99_v43 = vrot.slane %v98_v41, 1 }
  0x41   :  { %v105_v45 = vrot.slane %v104_v42, 1 }
  0x42   :  { %v100_v47 = vadd.f32 %v99_v43, %v98_v41 }
  0x43   :  { %v106_v48 = vadd.f32 %v105_v45, %v104_v42 }
  0x44   :  { %217 = vlog2.f32 %v100_v47 }
  0x45   :  { %219 = vlog2.f32 %v106_v48 }
  0x51   :  { %v218_v60 = vpop.eup %217 }
  0x52   :  { %v220_v62 = vpop.eup %219  ;;  %v108_v63 = vmul.f32 0.6931472, %v218_v60 }
  0x53   :  { %v110_v2 = vmul.f32 0.6931472, %v220_v62 }
  0x54   :  { %v137_v5 = vsub.f32 %v108_v63, %v130_v59 }
  0x55   :  { %v138_v6 = vsub.f32 %v110_v2, %v136_v61 }
  0x56   :  { %v160_v7 = vmul.f32 %v153_v0, %v137_v5 }
  0x57   :  { %v161_v8 = vmul.f32 %v157_v3, %v138_v6 }
  0x59   :  { %v166_v10 = vcombine.low %v160_v7, %v161_v8 }
  0x5b   :  { %v173_v11 = vrot.slane %v166_v10, %v172_v9 }
  0x5d   :  { %v180_v13 = vrot.slane %v173_v11, %v172_v9 }
  0x5f   :  { %v182_v14 = vadd.f32 %v180_v13, %v149_v12 }
  0x61   :  { %187 = vst.msk [vmem:[#allocation7] sm:$0x3] %vm313_vm0, %v182_v14 }
  0x62   :  { %272 = shalt.err (!%p269_p0)
}
  0x63   :  { %197 = dma.vmem_to_hbm [thread:$0]  %s195_s1, 32, %s326_s2, [#allocation4]  }
  0x64   :  { %285 = dma.done.wait [#allocation4], 32  }
  0x65   :  { %286 = vsyncadd [#allocation4], 4294967264 }
  0x66   :  { %201 = vsyncpa [#allocation3], 1 }
  0x67   :  { %202 = vsyncpa [#allocation6], 1 }
  0x68   :  { %203 = vsyncpa [#allocation4], 1 }

</bundles_post_ra>
